<compile_context>
chip_gen: v7x
topology: tpu7x:2x2x1
jax: 0.10.0
libtpu: 0.0.40
codegen_flags: <defaults>
</compile_context>

<pallas_src>
import functools

import jax
import jax.numpy as jnp
from jax.experimental import pallas as pl
from jax.experimental.pallas import tpu as pltpu


def _round_up(x: int, m: int) -> int:
    return (x + m - 1) // m * m


def _vmem_capacity_bytes() -> int:
    try:
        info = pltpu.get_tpu_info()
        return int(getattr(info, "vmem_capacity_bytes", 128 * 2**20))
    except Exception:
        return 128 * 2**20


def _elbo_kernel(x_ref, t_ref, out_ref, acc_ref, *, n_super, group, bands, c):
    """One (tile_n, C) row tile.

    Masked gather-sum of x[r, t[r]] into `bands` independent (group, C) f32
    accumulator bands held in VMEM scratch across grid steps of one split.
    """
    i = pl.program_id(1)  # position along the (reduction) row-tile axis

    @pl.when(i == 0)
    def _init():
        acc_ref[...] = jnp.zeros_like(acc_ref)

    # Column-index iota, built once per tile (hoisted out of the group loop).
    col = jax.lax.broadcasted_iota(jnp.int32, (group, c), 1)

    # Carry the accumulator bands in vector registers through the loop.
    accs = tuple(acc_ref[b * group:(b + 1) * group, :] for b in range(bands))

    super_rows = group * bands

    def body(sg, accs):
        base = sg * super_rows
        new = []
        for b in range(bands):  # independent bands -> independent add chains
            r0 = pl.multiple_of(base + b * group, group)
            xg = x_ref[pl.ds(r0, group), :]          # (group, C)  f32 or bf16
            tg = t_ref[pl.ds(r0, group), :]          # (group, 1)  i32 (-1 pad)
            sel = jnp.where(col == tg, xg.astype(jnp.float32), 0.0)
            new.append(accs[b] + sel)
        return tuple(new)

    unroll = n_super if n_super <= 4 else 2
    accs = jax.lax.fori_loop(0, n_super, body, accs, unroll=unroll)

    for b in range(bands):
        acc_ref[b * group:(b + 1) * group, :] = accs[b]

    # Epilogue for this row-range split: single cross-lane/sublane reduce.
    @pl.when(i == pl.num_programs(1) - 1)
    def _finalize():
        out_ref[0, 0] = jnp.sum(acc_ref[...])


def elbo_forward(input, target, kl, beta, train_size, *, n_splits=1,
                 tile_rows=None):
    """Pallas equivalent of ELBO(train_size).forward(input, target, kl, beta)."""
    n, c = input.shape
    x = input
    if x.dtype not in (jnp.float32, jnp.bfloat16):
        x = x.astype(jnp.float32)
    itemsize = jnp.dtype(x.dtype).itemsize

    # bf16 vregs are (16, 128): iterate 16-row groups for bf16, 8 for f32.
    group = 16 if itemsize == 2 else 8

    # Accumulator bands: keep K * ceil(C/128) <= 8 vregs of live accumulator.
    c_vregs = -(-c // 128)
    bands = max(1, min(4, 8 // c_vregs))
    super_rows = group * bands

    # Generation-aware tile sizing / VMEM budget.
    vmem_cap = _vmem_capacity_bytes()
    if vmem_cap <= 64 * 2**20:          # v7x-class: 64 MiB physical VMEM
        target_tile_bytes = 3 * 2**20
        vmem_limit_cap = 40 * 2**20
    else:                               # v5e / v6e: 128 MiB physical VMEM
        target_tile_bytes = 6 * 2**20
        vmem_limit_cap = 80 * 2**20

    if tile_rows is None:
        tile_rows = target_tile_bytes // (c * itemsize)
    tile_n = max(super_rows, (int(tile_rows) // super_rows) * super_rows)
    tile_n = min(tile_n, _round_up(max(n, 1), super_rows))

    n_pad = _round_up(max(n, 1), tile_n * n_splits)
    tiles_per_split = n_pad // (tile_n * n_splits)
    n_super = tile_n // super_rows

    # Only the tiny target vector is padded; padded rows get target = -1 so
    # they (and any garbage in a ragged last x-tile) contribute exactly 0.
    t_p = jnp.pad(target.astype(jnp.int32).reshape(n, 1),
                  ((0, n_pad - n), (0, 0)), constant_values=-1)

    last_x_blk = (n - 1) // tile_n  # last x block containing real rows

    def x_map(s, i, _t=tiles_per_split, _last=last_x_blk):
        blk = s * _t + i
        # Clamp so a fully-out-of-range block (possible when n_splits > 1 and
        # N is tiny) re-reads a valid block; its rows are masked via target=-1.
        return (jnp.minimum(blk, _last), 0)

    def t_map(s, i, _t=tiles_per_split):
        return (s * _t + i, 0)

    tile_bytes = tile_n * c * itemsize
    scratch_bytes = bands * group * _round_up(c, 128) * 4
    vmem_limit = int(min(vmem_limit_cap,
                         max(16 * 2**20,
                             2 * tile_bytes + 2 * tile_n * 4
                             + scratch_bytes + 4 * 2**20)))

    partials = pl.pallas_call(
        functools.partial(_elbo_kernel, n_super=n_super, group=group,
                          bands=bands, c=c),
        out_shape=jax.ShapeDtypeStruct((n_splits, 1), jnp.float32),
        grid_spec=pltpu.PrefetchScalarGridSpec(
            num_scalar_prefetch=0,
            grid=(n_splits, tiles_per_split),
            in_specs=[
                pl.BlockSpec((tile_n, c), x_map),    # log-prob tile (no padding)
                pl.BlockSpec((tile_n, 1), t_map),    # target tile
            ],
            out_specs=pl.BlockSpec((1, 1), lambda s, i: (s, 0),
                                   memory_space=pltpu.MemorySpace.SMEM),
            scratch_shapes=[pltpu.VMEM((bands * group, c), jnp.float32)],
        ),
        compiler_params=pltpu.CompilerParams(
            dimension_semantics=("parallel", "arbitrary"),
            vmem_limit_bytes=vmem_limit,
        ),
        cost_estimate=pl.CostEstimate(
            flops=3 * n_pad * c,
            transcendentals=0,
            bytes_accessed=n_pad * c * itemsize + n_pad * 4 + n_splits * 4,
        ),
    )(x, t_p)

    # Tiny scalar epilogue in the wrapper (combine per-split partials).
    selected_sum = jnp.sum(partials)
    nll_mean = -selected_sum / jnp.float32(n)      # divide by the TRUE N
    return (nll_mean * jnp.float32(train_size)
            + jnp.asarray(beta, jnp.float32) * jnp.asarray(kl, jnp.float32))


def elbo_reference(input, target, kl, beta, train_size):
    # Pure-JAX reference: F.nll_loss(input, target, 'mean') * train_size + beta*kl
    n = input.shape[0]
    picked = input[jnp.arange(n), target]
    nll = -jnp.mean(picked)
    return nll * train_size + beta * kl


if __name__ == "__main__":
    key = jax.random.PRNGKey(0)
    k1, k2, k3 = jax.random.split(key, 3)

    N, C = 24, 32
    train_size = 100.0

    logits = jax.random.normal(k1, (N, C), dtype=jnp.float32)
    log_probs = jax.nn.log_softmax(logits, axis=-1)            # "input" to nll_loss
    target = jax.random.randint(k2, (N,), 0, C, dtype=jnp.int32)
    kl = jnp.abs(jax.random.normal(k3, (), dtype=jnp.float32)) * 10.0
    beta = jnp.float32(0.25)

    # f32 path (single ragged tile).
    out = elbo_forward(log_probs, target, kl, beta, train_size)
    out = jax.block_until_ready(out)
    ref = elbo_reference(log_probs, target, kl, beta, train_size)
    assert jnp.allclose(out, ref, rtol=1e-5, atol=1e-5), (out, ref)

    # Multi-tile path with a ragged last tile (exercises grid accumulation).
    N2, C2 = 200, 96
    logits2 = jax.random.normal(k1, (N2, C2), dtype=jnp.float32)
    lp2 = jax.nn.log_softmax(logits2, axis=-1)
    tgt2 = jax.random.randint(k2, (N2,), 0, C2, dtype=jnp.int32)
    out2 = elbo_forward(lp2, tgt2, kl, beta, train_size, tile_rows=64)
    out2 = jax.block_until_ready(out2)
    ref2 = elbo_reference(lp2, tgt2, kl, beta, train_size)
    assert jnp.allclose(out2, ref2, rtol=1e-5, atol=1e-5), (out2, ref2)

    # bf16 input path (halves HBM traffic for the dominant stream).
    lp_bf16 = log_probs.astype(jnp.bfloat16)
    out_bf = elbo_forward(lp_bf16, target, kl, beta, train_size)
    out_bf = jax.block_until_ready(out_bf)
    ref_bf = elbo_reference(lp_bf16.astype(jnp.float32), target, kl, beta,
                            train_size)
    assert jnp.allclose(out_bf, ref_bf, rtol=1e-3, atol=1e-3), (out_bf, ref_bf)

    print("KERNEL_OK")
</pallas_src>

<mosaic_0001>
module attributes {stable_mosaic.version = 11 : i64} {
  func.func @_elbo_kernel(%arg0: i32, %arg1: i32, %arg2: memref<32x32xf32, #tpu.memory_space<vmem>>, %arg3: memref<32x1xi32, #tpu.memory_space<vmem>>, %arg4: memref<1x1xf32, #tpu.memory_space<smem>>, %arg5: memref<32x32xf32, #tpu.memory_space<vmem>>) attributes {dimension_semantics = [#tpu.dimension_semantics<parallel>, #tpu.dimension_semantics<arbitrary>], iteration_bounds = array<i64: 1, 1>, scalar_prefetch = 0 : i64, scratch_operands = 1 : i64, tpu.core_type = #tpu.core_type<tc>, window_params = [{transform_indices = @transform_0, window_bounds = array<i64: 32, 32>}, {transform_indices = @transform_1, window_bounds = array<i64: 32, 1>}, {transform_indices = @transform_2, window_bounds = array<i64: 1, 1>}]} {
    %c0_i32 = arith.constant 0 : i32
    %0 = arith.cmpi eq, %arg1, %c0_i32 : i32
    %1 = arith.extui %0 : i1 to i32
    %c0_i32_0 = arith.constant 0 : i32
    %2 = arith.cmpi ne, %1, %c0_i32_0 : i32
    scf.if %2 {
      %cst_28 = arith.constant 0.000000e+00 : f32
      %60 = vector.broadcast %cst_28 : f32 to vector<32x32xf32>
      %c0_29 = arith.constant 0 : index
      %c0_30 = arith.constant 0 : index
      %61 = vector.load %arg5[%c0_29, %c0_30] : memref<32x32xf32, #tpu.memory_space<vmem>>, vector<32x32xf32>
      tpu.vector_store %arg5[%c0_29, %c0_30], %60 {strides = array<i32>} : memref<32x32xf32, #tpu.memory_space<vmem>>, vector<32x32xf32>,
    } else {
    }
    %3 = tpu.iota {dimensions = array<i32: 1>} : vector<8x32xi32>
    %c0 = arith.constant 0 : index
    %c0_1 = arith.constant 0 : index
    %4 = vector.load %arg5[%c0, %c0_1] : memref<32x32xf32, #tpu.memory_space<vmem>>, vector<8x32xf32>
    %c8 = arith.constant 8 : index
    %c0_2 = arith.constant 0 : index
    %5 = vector.load %arg5[%c8, %c0_2] : memref<32x32xf32, #tpu.memory_space<vmem>>, vector<8x32xf32>
    %c16 = arith.constant 16 : index
    %c0_3 = arith.constant 0 : index
    %6 = vector.load %arg5[%c16, %c0_3] : memref<32x32xf32, #tpu.memory_space<vmem>>, vector<8x32xf32>
    %c24 = arith.constant 24 : index
    %c0_4 = arith.constant 0 : index
    %7 = vector.load %arg5[%c24, %c0_4] : memref<32x32xf32, #tpu.memory_space<vmem>>, vector<8x32xf32>
    %c0_i32_5 = arith.constant 0 : i32
    %c32_i32 = arith.constant 32 : i32
    %8 = arith.muli %c0_i32_5, %c32_i32 : i32
    %c0_i32_6 = arith.constant 0 : i32
    %9 = arith.addi %8, %c0_i32_6 : i32
    %10 = tpu.assume_multiple %9, 8 : i32
    %11 = arith.index_cast %10 : i32 to index
    %c0_7 = arith.constant 0 : index
    %12 = vector.load %arg2[%11, %c0_7] : memref<32x32xf32, #tpu.memory_space<vmem>>, vector<8x32xf32>
    %13 = arith.index_cast %10 : i32 to index
    %c0_8 = arith.constant 0 : index
    %14 = vector.load %arg3[%13, %c0_8] : memref<32x1xi32, #tpu.memory_space<vmem>>, vector<8x1xi32>
    %15 = vector.broadcast %14 : vector<8x1xi32> to vector<8x32xi32>
    %16 = arith.cmpi eq, %3, %15 : vector<8x32xi32>
    %cst = arith.constant 0.000000e+00 : f32
    %17 = vector.broadcast %cst : f32 to vector<8x32xf32>
    %18 = arith.select %16, %12, %17 : vector<8x32xi1>, vector<8x32xf32>
    %19 = arith.addf %4, %18 : vector<8x32xf32>
    %c8_i32 = arith.constant 8 : i32
    %20 = arith.addi %8, %c8_i32 : i32
    %21 = tpu.assume_multiple %20, 8 : i32
    %22 = arith.index_cast %21 : i32 to index
    %c0_9 = arith.constant 0 : index
    %23 = vector.load %arg2[%22, %c0_9] : memref<32x32xf32, #tpu.memory_space<vmem>>, vector<8x32xf32>
    %24 = arith.index_cast %21 : i32 to index
    %c0_10 = arith.constant 0 : index
    %25 = vector.load %arg3[%24, %c0_10] : memref<32x1xi32, #tpu.memory_space<vmem>>, vector<8x1xi32>
    %26 = vector.broadcast %25 : vector<8x1xi32> to vector<8x32xi32>
    %27 = arith.cmpi eq, %3, %26 : vector<8x32xi32>
    %cst_11 = arith.constant 0.000000e+00 : f32
    %28 = vector.broadcast %cst_11 : f32 to vector<8x32xf32>
    %29 = arith.select %27, %23, %28 : vector<8x32xi1>, vector<8x32xf32>
    %30 = arith.addf %5, %29 : vector<8x32xf32>
    %c16_i32 = arith.constant 16 : i32
    %31 = arith.addi %8, %c16_i32 : i32
    %32 = tpu.assume_multiple %31, 8 : i32
    %33 = arith.index_cast %32 : i32 to index
    %c0_12 = arith.constant 0 : index
    %34 = vector.load %arg2[%33, %c0_12] : memref<32x32xf32, #tpu.memory_space<vmem>>, vector<8x32xf32>
    %35 = arith.index_cast %32 : i32 to index
    %c0_13 = arith.constant 0 : index
    %36 = vector.load %arg3[%35, %c0_13] : memref<32x1xi32, #tpu.memory_space<vmem>>, vector<8x1xi32>
    %37 = vector.broadcast %36 : vector<8x1xi32> to vector<8x32xi32>
    %38 = arith.cmpi eq, %3, %37 : vector<8x32xi32>
    %cst_14 = arith.constant 0.000000e+00 : f32
    %39 = vector.broadcast %cst_14 : f32 to vector<8x32xf32>
    %40 = arith.select %38, %34, %39 : vector<8x32xi1>, vector<8x32xf32>
    %41 = arith.addf %6, %40 : vector<8x32xf32>
    %c24_i32 = arith.constant 24 : i32
    %42 = arith.addi %8, %c24_i32 : i32
    %43 = tpu.assume_multiple %42, 8 : i32
    %44 = arith.index_cast %43 : i32 to index
    %c0_15 = arith.constant 0 : index
    %45 = vector.load %arg2[%44, %c0_15] : memref<32x32xf32, #tpu.memory_space<vmem>>, vector<8x32xf32>
    %46 = arith.index_cast %43 : i32 to index
    %c0_16 = arith.constant 0 : index
    %47 = vector.load %arg3[%46, %c0_16] : memref<32x1xi32, #tpu.memory_space<vmem>>, vector<8x1xi32>
    %48 = vector.broadcast %47 : vector<8x1xi32> to vector<8x32xi32>
    %49 = arith.cmpi eq, %3, %48 : vector<8x32xi32>
    %cst_17 = arith.constant 0.000000e+00 : f32
    %50 = vector.broadcast %cst_17 : f32 to vector<8x32xf32>
    %51 = arith.select %49, %45, %50 : vector<8x32xi1>, vector<8x32xf32>
    %52 = arith.addf %7, %51 : vector<8x32xf32>
    %c1_i32 = arith.constant 1 : i32
    %c0_18 = arith.constant 0 : index
    %c0_19 = arith.constant 0 : index
    %53 = vector.load %arg5[%c0_18, %c0_19] : memref<32x32xf32, #tpu.memory_space<vmem>>, vector<8x32xf32>
    tpu.vector_store %arg5[%c0_18, %c0_19], %19 {strides = array<i32>} : memref<32x32xf32, #tpu.memory_space<vmem>>, vector<8x32xf32>,
    %c8_20 = arith.constant 8 : index
    %c0_21 = arith.constant 0 : index
    %54 = vector.load %arg5[%c8_20, %c0_21] : memref<32x32xf32, #tpu.memory_space<vmem>>, vector<8x32xf32>
    tpu.vector_store %arg5[%c8_20, %c0_21], %30 {strides = array<i32>} : memref<32x32xf32, #tpu.memory_space<vmem>>, vector<8x32xf32>,
    %c16_22 = arith.constant 16 : index
    %c0_23 = arith.constant 0 : index
    %55 = vector.load %arg5[%c16_22, %c0_23] : memref<32x32xf32, #tpu.memory_space<vmem>>, vector<8x32xf32>
    tpu.vector_store %arg5[%c16_22, %c0_23], %41 {strides = array<i32>} : memref<32x32xf32, #tpu.memory_space<vmem>>, vector<8x32xf32>,
    %c24_24 = arith.constant 24 : index
    %c0_25 = arith.constant 0 : index
    %56 = vector.load %arg5[%c24_24, %c0_25] : memref<32x32xf32, #tpu.memory_space<vmem>>, vector<8x32xf32>
    tpu.vector_store %arg5[%c24_24, %c0_25], %52 {strides = array<i32>} : memref<32x32xf32, #tpu.memory_space<vmem>>, vector<8x32xf32>,
    %c0_i32_26 = arith.constant 0 : i32
    %57 = arith.cmpi eq, %arg1, %c0_i32_26 : i32
    %58 = arith.extui %57 : i1 to i32
    %c0_i32_27 = arith.constant 0 : i32
    %59 = arith.cmpi ne, %58, %c0_i32_27 : i32
    scf.if %59 {
      %c0_28 = arith.constant 0 : index
      %c0_29 = arith.constant 0 : index
      %60 = vector.load %arg5[%c0_28, %c0_29] : memref<32x32xf32, #tpu.memory_space<vmem>>, vector<32x32xf32>
      %61 = vector.shape_cast %60 : vector<32x32xf32> to vector<1x32x32xf32>
      %cst_30 = arith.constant dense<0.000000e+00> : vector<1xf32>
      %62 = vector.multi_reduction <add>, %61, %cst_30 [1, 2] : vector<1x32x32xf32> to vector<1xf32>
      %63 = vector.shape_cast %62 : vector<1xf32> to vector<1x1x1xf32>
      %64 = vector.extract %63[0, 0, 0] : f32 from vector<1x1x1xf32>
      %c0_31 = arith.constant 0 : index
      %c0_32 = arith.constant 0 : index
      %65 = memref.load %arg4[%c0_31, %c0_32] : memref<1x1xf32, #tpu.memory_space<smem>>
      memref.store %64, %arg4[%c0_31, %c0_32] : memref<1x1xf32, #tpu.memory_space<smem>>
    } else {
    }
    return
  }
  func.func @transform_0(%arg0: i32, %arg1: i32) -> (i32, i32) {
    %c1_i32 = arith.constant 1 : i32
    %0 = arith.muli %arg0, %c1_i32 : i32
    %1 = arith.addi %0, %arg1 : i32
    %c0_i32 = arith.constant 0 : i32
    %2 = arith.minsi %1, %c0_i32 : i32
    %c0_i32_0 = arith.constant 0 : i32
    %c0_i32_1 = arith.constant 0 : i32
    return %2, %c0_i32_0 : i32, i32
  }
  func.func @transform_1(%arg0: i32, %arg1: i32) -> (i32, i32) {
    %c1_i32 = arith.constant 1 : i32
    %0 = arith.muli %arg0, %c1_i32 : i32
    %1 = arith.addi %0, %arg1 : i32
    %c0_i32 = arith.constant 0 : i32
    %c0_i32_0 = arith.constant 0 : i32
    return %1, %c0_i32 : i32, i32
  }
  func.func @transform_2(%arg0: i32, %arg1: i32) -> (i32, i32) {
    %c0_i32 = arith.constant 0 : i32
    %c0_i32_0 = arith.constant 0 : i32
    return %arg0, %c0_i32 : i32, i32
  }
}

</mosaic_0001>

<bundles_post_ra>
// kernel: tpu_custom_call.1
= control target key start
LH: loop header
LB: loop body
LE: loop exit
PB: predicated region body
PF: predicated region fallthrough
CT: control target
= control target key end

     0   :  { %vm80_vm0 = vcmask 261120   ;;  %v209_v2 = vmov 0   ;;  %v210_v3 = vmov 0.0   ;;  %s275_s0 = inlined_call_operand.vmem [shape: f32[24,32], index: 0, kind: input, shape index: {}]   ;;  %s276_s1 = inlined_call_operand.vmem [shape: s32[32,1], index: 1, kind: input, shape index: {}]   ;;  %s277_s2 = inlined_call_operand.hbm [shape: f32[1,1], index: 2, kind: output, shape index: {}]  }
   0x1   :  { %v187_v0 = vld [vmem:[%s276_s1 + $0x10] sm:$0xff]  ;;  %v92_v1 = vld [vmem:[%s276_s1] sm:$0xff]  ;;  %196 = vset.pattern.permute.xlu1 %v209_v2  ;;  %195 = vset.pattern.permute.xlu0 %v209_v2  ;;  %83 = vst.msk [vmem:[#allocation2 + $0x10] sm:$0xff] %vm80_vm0, %v210_v3  ;;  %81 = vst.msk [vmem:[#allocation2] sm:$0xff] %vm80_vm0, %v210_v3 }
   0x2   :  { %82 = vst.msk [vmem:[#allocation2 + $0x8] sm:$0xff] %vm80_vm0, %v210_v3  ;;  %84 = vst.msk [vmem:[#allocation2 + $0x18] sm:$0xff] %vm80_vm0, %v210_v3 }
   0x3   :  { %7 = vsyncpa [#allocation4], 0  ;;  %114 = vperm.xlu1 %196, %v187_v0   ;;  %94 = vperm.xlu0 %195, %v92_v1   ;;  %v189_v4 = vld [vmem:[%s276_s1 + $0x18] sm:$0xff]  ;;  %v185_v5 = vld [vmem:[%s276_s1 + $0x8] sm:$0xff]  ;;  %v85_v6 = vlaneseq  ;;  %s197_s26 = scalar_lea.hbm %s277_s2, 16 }
   0x4   :  { %v186_v8 = vld [vmem:[%s275_s0 + $0x10] sm:$0xff]  ;;  %v91_v9 = vld [vmem:[%s275_s0] sm:$0xff]  ;;  %v188_v18 = vld [vmem:[%s275_s0 + $0x18] sm:$0xff]  ;;  %p198_p0 = scmp.ne.s32.totalorder %s277_s2, %s197_s26  ;;  %p201_p1 = scmp.lt.u32.totalorder %s197_s26, %s277_s2 }
   0x5   :  { %v86_v7 = vand.u32 127, %v85_v6  ;;  %v184_v19 = vld [vmem:[%s275_s0 + $0x8] sm:$0xff] }
   0x6   :  { %p203_p2 = pnand %p201_p1, %p198_p0 }
   0x7   :  { %124 = vperm.xlu1 %196, %v189_v4   ;;  %104 = vperm.xlu0 %195, %v185_v5  }
   0x8   :  { %v89_v11 = vld [vmem:[#allocation2 + $0x10] sm:$0xff]  ;;  %v87_v13 = vld [vmem:[#allocation2] sm:$0xff] }
   0x9   :  { %v90_v21 = vld [vmem:[#allocation2 + $0x18] sm:$0xff]  ;;  %v88_v23 = vld [vmem:[#allocation2 + $0x8] sm:$0xff] }
  0x82   :  { %v115_v10 = vpop.permute.xlu1 %114  ;;  %v95_v12 = vpop.permute.xlu0 %94 }
  0x83   :  { %vm116_vm1 = vcmp.eq.s32.totalorder %v86_v7, %v115_v10  ;;  %vm96_vm2 = vcmp.eq.s32.totalorder %v86_v7, %v95_v12 }
  0x84   :  { %v117_v14 = vsel %vm116_vm1, %v186_v8, 0.0  ;;  %v97_v15 = vsel %vm96_vm2, %v91_v9, 0.0 }
  0x85   :  { %v118_v16 = vadd.f32 %v117_v14, %v89_v11  ;;  %v98_v17 = vadd.f32 %v97_v15, %v87_v13 }
  0x86   :  { %v125_v20 = vpop.permute.xlu1 %124  ;;  %v105_v22 = vpop.permute.xlu0 %104 }
  0x87   :  { %132 = vst.msk [vmem:[#allocation2 + $0x10] sm:$0xff] %vm80_vm0, %v118_v16  ;;  %130 = vst.msk [vmem:[#allocation2] sm:$0xff] %vm80_vm0, %v98_v17  ;;  %vm126_vm3 = vcmp.eq.s32.totalorder %v86_v7, %v125_v20  ;;  %vm106_vm4 = vcmp.eq.s32.totalorder %v86_v7, %v105_v22 }
  0x88   :  { %v127_v24 = vsel %vm126_vm3, %v188_v18, 0.0  ;;  %v107_v25 = vsel %vm106_vm4, %v184_v19, 0.0 }
  0x89   :  { %v128_v26 = vadd.f32 %v127_v24, %v90_v21  ;;  %v108_v27 = vadd.f32 %v107_v25, %v88_v23 }
  0x8b   :  { %133 = vst.msk [vmem:[#allocation2 + $0x18] sm:$0xff] %vm80_vm0, %v128_v26  ;;  %131 = vst.msk [vmem:[#allocation2 + $0x8] sm:$0xff] %vm80_vm0, %v108_v27 }
  0x8e   :  { %v137_v28 = vld [vmem:[#allocation2] sm:$0xff]  ;;  %v139_v30 = vld [vmem:[#allocation2 + $0x10] sm:$0xff] }
  0x8f   :  { %v141_v31 = vsel %vm80_vm0, %v137_v28, 0.0  ;;  %v144_v35 = vsel %vm80_vm0, %v139_v30, 0.0 }
  0x92   :  { %v138_v29 = vld [vmem:[#allocation2 + $0x8] sm:$0xff]  ;;  %v140_v33 = vld [vmem:[#allocation2 + $0x18] sm:$0xff] }
  0x93   :  { %v142_v32 = vsel %vm80_vm0, %v138_v29, 0.0  ;;  %v146_v37 = vsel %vm80_vm0, %v140_v33, 0.0 }
  0x94   :  { %v143_v34 = vadd.f32 %v142_v32, %v141_v31 }
  0x96   :  { %v145_v36 = vadd.f32 %v144_v35, %v143_v34 }
  0x98   :  { %v147_v38 = vadd.f32 %v146_v37, %v145_v36 }
  0x9a   :  { %148 = vadd.xlane.f32.xlu0 %v147_v38 }
 0x127   :  { %v149_v39 = vpop.xlane.xlu0 %148 }
 0x128   :  { %v150_v40 = vrot.slane %v149_v39, 4 }
 0x12a   :  { %v151_v41 = vadd.f32 %v150_v40, %v149_v39 }
 0x12c   :  { %v152_v42 = vrot.slane %v151_v41, 2 }
 0x12e   :  { %v153_v43 = vadd.f32 %v152_v42, %v151_v41 }
 0x130   :  { %v154_v44 = vrot.slane %v153_v43, 1 }
 0x132   :  { %v155_v45 = vadd.f32 %v154_v44, %v153_v43 }
 0x134   :  { %190 = vpush %v155_v45 }
 0x165   :  { %s191_s0 = spop %190 }
 0x166   :  { %158 = sst [smem:[#allocation3]] %s191_s0 }
 0x167   :  { %206 = shalt.err (!%p203_p2)
}
 0x168   :  { %s211_s3 = smov [#allocation3]  }
 0x169   :  { %166 = dma.smem_to_hbm %s211_s3, 16, %s277_s2, [#allocation4]  }
 0x16a   :  { %207 = dma.done.wait [#allocation4], 16  }
 0x16b   :  { %208 = vsyncadd [#allocation4], 4294967280 }
 0x16c   :  { %170 = sfence }
 0x16d   :  { %171 = vsyncpa [#allocation4], 1 }

</bundles_post_ra>
